<compile_context>
chip_gen: v7x
topology: tpu7x:2x2x1
jax: 0.10.0
libtpu: 0.0.40
codegen_flags: <defaults>
</compile_context>

<pallas_src>
import functools

import jax
import jax.numpy as jnp
from jax import lax
from jax.experimental import pallas as pl
from jax.experimental.pallas import tpu as pltpu


def _attention_kernel(x_ref, wqkv_ref, wout_ref, bout_ref, o_ref,
                      *, heads, dim_head):
    # x_ref    : (1, N, C)   bf16  one batch element, sequence-major
    # wqkv_ref : (C, 3*H*D)  bf16  qkv 1x1-conv weight, scale folded into q cols
    # wout_ref : (C, H*D)    bf16  to_out 1x1-conv weight
    # bout_ref : (1, C)      f32   to_out bias
    # o_ref    : (1, N, C)   f32
    hidden = heads * dim_head
    x = x_ref[0]                                            # (N, C) bf16
    n = x.shape[0]
    dim = wout_ref.shape[0]

    # 1x1 conv == channel matmul in sequence-major layout:
    # (N, C) @ (C, 3*H*D) -> (N, 3*H*D); lane dim = 3*H*D (dense).
    qkv = jnp.dot(x, wqkv_ref[...], preferred_element_type=jnp.float32)
    # These slices sit on 128-lane (vreg-aligned) boundaries when H*D == 128.
    q = qkv[:, 0 * hidden:1 * hidden].astype(jnp.bfloat16)  # (N, H*D)
    k = qkv[:, 1 * hidden:2 * hidden].astype(jnp.bfloat16)
    v = qkv[:, 2 * hidden:3 * hidden].astype(jnp.bfloat16)

    # to_out projection accumulated per head (no concat, short live ranges).
    y = jnp.zeros((n, dim), jnp.float32)

    for h in range(heads):                                  # small, static
        sl = slice(h * dim_head, (h + 1) * dim_head)
        qh = q[:, sl]                                       # (N, D) bf16 (pre-scaled)
        kh = k[:, sl]                                       # (N, D) bf16
        vh = v[:, sl]                                       # (N, D) bf16

        # sim[i, j] = sum_d q[i, d] * k[j, d]   (NT matmul, no transpose)
        sim = lax.dot_general(qh, kh, (((1,), (1,)), ((), ())),
                              preferred_element_type=jnp.float32)      # (N, N)
        sim = sim - jnp.max(sim, axis=-1, keepdims=True)
        p = jnp.exp(sim)
        inv_denom = pl.reciprocal(jnp.sum(p, axis=-1, keepdims=True),
                                  approx=True)
        attn = (p * inv_denom).astype(jnp.bfloat16)                    # (N, N)

        # out_h[i, d] = sum_j attn[i, j] * v[j, d]
        out_h = jnp.dot(attn, vh, preferred_element_type=jnp.float32)  # (N, D)

        # fold to_out: (N, D) x (C, D)^T -> (N, C), accumulate in f32
        wout_h = wout_ref[:, sl]                                       # (C, D)
        y = y + lax.dot_general(out_h.astype(jnp.bfloat16), wout_h,
                                (((1,), (1,)), ((), ())),
                                preferred_element_type=jnp.float32)

    y = y + bout_ref[...]                                   # (1, C) broadcast
    o_ref[0] = y.astype(o_ref.dtype)


def attention_forward(x, w_qkv, w_out, b_out, *, heads, dim_head):
    """x: (B, C, N) f32; w_qkv: (3*H*D, C); w_out: (C, H*D); b_out: (C,).

    Returns (B, C, N) f32, matching the PyTorch module forward.
    """
    B, C, N = x.shape
    hidden = heads * dim_head
    scale = dim_head ** -0.5

    # One-time host-side prep (layout plumbing, not compute):
    #  - fold the softmax scale into the q rows of the qkv weight
    #  - transpose to sequence-major operand layouts
    #  - cast matmul operands to bf16 (f32 accumulation kept inside the kernel)
    w_qkv_scaled = w_qkv.at[:hidden, :].multiply(scale)
    wqkv_t = jnp.transpose(w_qkv_scaled).astype(jnp.bfloat16)      # (C, 3*H*D)
    wout = w_out.astype(jnp.bfloat16)                              # (C, H*D)
    bout = b_out.reshape(1, C).astype(jnp.float32)                 # (1, C)
    x_nc = jnp.transpose(x, (0, 2, 1)).astype(jnp.bfloat16)        # (B, N, C)

    kernel = functools.partial(_attention_kernel, heads=heads, dim_head=dim_head)

    out_nc = pl.pallas_call(
        kernel,
        out_shape=jax.ShapeDtypeStruct((B, N, C), jnp.float32),
        grid_spec=pltpu.PrefetchScalarGridSpec(
            num_scalar_prefetch=0,
            grid=(B,),
            in_specs=[
                pl.BlockSpec((1, N, C), lambda b: (b, 0, 0)),
                pl.BlockSpec((C, 3 * hidden), lambda b: (0, 0)),
                pl.BlockSpec((C, hidden), lambda b: (0, 0)),
                pl.BlockSpec((1, C), lambda b: (0, 0)),
            ],
            out_specs=pl.BlockSpec((1, N, C), lambda b: (b, 0, 0)),
        ),
        compiler_params=pltpu.CompilerParams(
            dimension_semantics=("parallel",),
            vmem_limit_bytes=32 * 1024 * 1024,   # explicit, safe on v5e/v6e/v7x
        ),
    )(x_nc, wqkv_t, wout, bout)

    # Back to PyTorch Conv1d layout.
    return jnp.transpose(out_nc, (0, 2, 1)).astype(x.dtype)


def attention_reference(x, w_qkv, w_out, b_out, *, heads, dim_head):
    """Pure-JAX f32 reference matching the PyTorch forward."""
    B, C, N = x.shape
    hidden = heads * dim_head
    scale = dim_head ** -0.5
    qkv = jnp.einsum('oc,bcn->bon', w_qkv, x)                   # (B, 3*HD, N)
    q, k, v = jnp.split(qkv, 3, axis=1)
    rearr = lambda t: t.reshape(B, heads, dim_head, N)          # 'b (h c) n -> b h c n'
    q, k, v = map(rearr, (q, k, v))
    q = q * scale
    sim = jnp.einsum('bhdi,bhdj->bhij', q, k)
    attn = jax.nn.softmax(sim, axis=-1)
    out = jnp.einsum('bhij,bhdj->bhid', attn, v)                # (B, H, N, D)
    out = jnp.transpose(out, (0, 1, 3, 2)).reshape(B, hidden, N)  # 'b h n d -> b (h d) n'
    return jnp.einsum('ch,bhn->bcn', w_out, out) + b_out[None, :, None]


if __name__ == "__main__":
    # Module hyper-parameters (matching Attention(dim, heads=4, dim_head=32))
    dim, heads, dim_head = 8, 4, 32
    hidden = heads * dim_head
    B, N = 2, 16

    key = jax.random.PRNGKey(0)
    k_x, k_wqkv, k_wout, k_bout = jax.random.split(key, 4)

    # Deterministic synthetic parameters (Conv1d weights with kernel size 1,
    # squeezed to 2-D: (out_channels, in_channels)).
    x = jax.random.normal(k_x, (B, dim, N), dtype=jnp.float32)
    w_qkv = jax.random.normal(k_wqkv, (hidden * 3, dim), dtype=jnp.float32) * 0.1
    w_out = jax.random.normal(k_wout, (dim, hidden), dtype=jnp.float32) * 0.1
    b_out = jax.random.normal(k_bout, (dim,), dtype=jnp.float32) * 0.1

    out = attention_forward(x, w_qkv, w_out, b_out, heads=heads, dim_head=dim_head)
    out = jax.block_until_ready(out)

    ref = attention_reference(x, w_qkv, w_out, b_out, heads=heads, dim_head=dim_head)
    assert out.shape == (B, dim, N)
    # bf16 matmul operands (f32 accumulation) -> relaxed tolerance vs f32 reference.
    assert jnp.allclose(out, ref, atol=2e-2, rtol=2e-2), "mismatch vs reference"

    print("KERNEL_OK")
</pallas_src>

<mosaic_0001>
module attributes {stable_mosaic.version = 11 : i64} {
  func.func @_attention_kernel(%arg0: i32, %arg1: memref<1x16x8xbf16, #tpu.memory_space<vmem>>, %arg2: memref<8x384xbf16, #tpu.memory_space<vmem>>, %arg3: memref<8x128xbf16, #tpu.memory_space<vmem>>, %arg4: memref<1x8xf32, #tpu.memory_space<vmem>>, %arg5: memref<1x16x8xf32, #tpu.memory_space<vmem>>) attributes {dimension_semantics = [#tpu.dimension_semantics<parallel>], iteration_bounds = array<i64: 2>, scalar_prefetch = 0 : i64, scratch_operands = 0 : i64, tpu.core_type = #tpu.core_type<tc>, window_params = [{transform_indices = @transform_0, window_bounds = array<i64: 1, 16, 8>}, {pipeline_mode = #tpu.pipeline_mode<synchronous>, transform_indices = @transform_1, window_bounds = array<i64: 8, 384>}, {pipeline_mode = #tpu.pipeline_mode<synchronous>, transform_indices = @transform_2, window_bounds = array<i64: 8, 128>}, {pipeline_mode = #tpu.pipeline_mode<synchronous>, transform_indices = @transform_3, window_bounds = array<i64: 1, 8>}, {transform_indices = @transform_4, window_bounds = array<i64: 1, 16, 8>}]} {
    %c0 = arith.constant 0 : index
    %c0_0 = arith.constant 0 : index
    %c0_1 = arith.constant 0 : index
    %0 = vector.load %arg1[%c0, %c0_0, %c0_1] : memref<1x16x8xbf16, #tpu.memory_space<vmem>>, vector<1x16x8xbf16>
    %1 = vector.shape_cast %0 : vector<1x16x8xbf16> to vector<16x8xbf16>
    %c0_2 = arith.constant 0 : index
    %c0_3 = arith.constant 0 : index
    %2 = vector.load %arg2[%c0_2, %c0_3] : memref<8x384xbf16, #tpu.memory_space<vmem>>, vector<8x384xbf16>
    %cst = arith.constant dense<0.000000e+00> : vector<16x384xf32>
    %3 = tpu.matmul %1, %2, %cst {dimension_numbers = #tpu.dot_dimension_numbers<[1], [0], [0], [1], [0, 0, 1, 1], [], []>} : vector<16x8xbf16>, vector<8x384xbf16>, vector<16x384xf32> -> vector<16x384xf32>
    %4 = vector.extract_strided_slice %3 {offsets = [0, 0], sizes = [16, 128], strides = [1, 1]} : vector<16x384xf32> to vector<16x128xf32>
    %5 = arith.truncf %4 : vector<16x128xf32> to vector<16x128xbf16>
    %6 = vector.extract_strided_slice %3 {offsets = [0, 128], sizes = [16, 128], strides = [1, 1]} : vector<16x384xf32> to vector<16x128xf32>
    %7 = arith.truncf %6 : vector<16x128xf32> to vector<16x128xbf16>
    %8 = vector.extract_strided_slice %3 {offsets = [0, 256], sizes = [16, 128], strides = [1, 1]} : vector<16x384xf32> to vector<16x128xf32>
    %9 = arith.truncf %8 : vector<16x128xf32> to vector<16x128xbf16>
    %cst_4 = arith.constant 0.000000e+00 : f32
    %10 = vector.broadcast %cst_4 : f32 to vector<16x8xf32>
    %11 = vector.extract_strided_slice %5 {offsets = [0, 0], sizes = [16, 32], strides = [1, 1]} : vector<16x128xbf16> to vector<16x32xbf16>
    %12 = vector.extract_strided_slice %7 {offsets = [0, 0], sizes = [16, 32], strides = [1, 1]} : vector<16x128xbf16> to vector<16x32xbf16>
    %13 = vector.extract_strided_slice %9 {offsets = [0, 0], sizes = [16, 32], strides = [1, 1]} : vector<16x128xbf16> to vector<16x32xbf16>
    %cst_5 = arith.constant dense<0.000000e+00> : vector<16x16xf32>
    %14 = tpu.matmul %11, %12, %cst_5 {dimension_numbers = #tpu.dot_dimension_numbers<[1], [1], [0], [0], [0, 0, 1, 0], [], []>} : vector<16x32xbf16>, vector<16x32xbf16>, vector<16x16xf32> -> vector<16x16xf32>
    %cst_6 = arith.constant dense<0xFF800000> : vector<16xf32>
    %15 = vector.multi_reduction <maximumf>, %14, %cst_6 [1] : vector<16x16xf32> to vector<16xf32>
    %16 = vector.shape_cast %15 : vector<16xf32> to vector<16x1xf32>
    %17 = vector.broadcast %16 : vector<16x1xf32> to vector<16x16xf32>
    %18 = arith.subf %14, %17 : vector<16x16xf32>
    %19 = math.exp %18 : vector<16x16xf32>
    %cst_7 = arith.constant dense<0.000000e+00> : vector<16xf32>
    %20 = vector.multi_reduction <add>, %19, %cst_7 [1] : vector<16x16xf32> to vector<16xf32>
    %21 = vector.shape_cast %20 : vector<16xf32> to vector<16x1xf32>
    %22 = tpu.reciprocal %21 {approx = true} : vector<16x1xf32> -> vector<16x1xf32>
    %23 = vector.broadcast %22 : vector<16x1xf32> to vector<16x16xf32>
    %24 = arith.mulf %19, %23 : vector<16x16xf32>
    %25 = arith.truncf %24 : vector<16x16xf32> to vector<16x16xbf16>
    %cst_8 = arith.constant dense<0.000000e+00> : vector<16x32xf32>
    %26 = tpu.matmul %25, %13, %cst_8 {dimension_numbers = #tpu.dot_dimension_numbers<[1], [0], [0], [1], [0, 0, 1, 1], [], []>} : vector<16x16xbf16>, vector<16x32xbf16>, vector<16x32xf32> -> vector<16x32xf32>
    %c0_9 = arith.constant 0 : index
    %c0_10 = arith.constant 0 : index
    %27 = vector.load %arg3[%c0_9, %c0_10] : memref<8x128xbf16, #tpu.memory_space<vmem>>, vector<8x32xbf16>
    %28 = arith.truncf %26 : vector<16x32xf32> to vector<16x32xbf16>
    %cst_11 = arith.constant dense<0.000000e+00> : vector<16x8xf32>
    %29 = tpu.matmul %28, %27, %cst_11 {dimension_numbers = #tpu.dot_dimension_numbers<[1], [1], [0], [0], [0, 0, 1, 0], [], []>} : vector<16x32xbf16>, vector<8x32xbf16>, vector<16x8xf32> -> vector<16x8xf32>
    %30 = arith.addf %10, %29 : vector<16x8xf32>
    %31 = vector.extract_strided_slice %5 {offsets = [0, 32], sizes = [16, 32], strides = [1, 1]} : vector<16x128xbf16> to vector<16x32xbf16>
    %32 = vector.extract_strided_slice %7 {offsets = [0, 32], sizes = [16, 32], strides = [1, 1]} : vector<16x128xbf16> to vector<16x32xbf16>
    %33 = vector.extract_strided_slice %9 {offsets = [0, 32], sizes = [16, 32], strides = [1, 1]} : vector<16x128xbf16> to vector<16x32xbf16>
    %cst_12 = arith.constant dense<0.000000e+00> : vector<16x16xf32>
    %34 = tpu.matmul %31, %32, %cst_12 {dimension_numbers = #tpu.dot_dimension_numbers<[1], [1], [0], [0], [0, 0, 1, 0], [], []>} : vector<16x32xbf16>, vector<16x32xbf16>, vector<16x16xf32> -> vector<16x16xf32>
    %cst_13 = arith.constant dense<0xFF800000> : vector<16xf32>
    %35 = vector.multi_reduction <maximumf>, %34, %cst_13 [1] : vector<16x16xf32> to vector<16xf32>
    %36 = vector.shape_cast %35 : vector<16xf32> to vector<16x1xf32>
    %37 = vector.broadcast %36 : vector<16x1xf32> to vector<16x16xf32>
    %38 = arith.subf %34, %37 : vector<16x16xf32>
    %39 = math.exp %38 : vector<16x16xf32>
    %cst_14 = arith.constant dense<0.000000e+00> : vector<16xf32>
    %40 = vector.multi_reduction <add>, %39, %cst_14 [1] : vector<16x16xf32> to vector<16xf32>
    %41 = vector.shape_cast %40 : vector<16xf32> to vector<16x1xf32>
    %42 = tpu.reciprocal %41 {approx = true} : vector<16x1xf32> -> vector<16x1xf32>
    %43 = vector.broadcast %42 : vector<16x1xf32> to vector<16x16xf32>
    %44 = arith.mulf %39, %43 : vector<16x16xf32>
    %45 = arith.truncf %44 : vector<16x16xf32> to vector<16x16xbf16>
    %cst_15 = arith.constant dense<0.000000e+00> : vector<16x32xf32>
    %46 = tpu.matmul %45, %33, %cst_15 {dimension_numbers = #tpu.dot_dimension_numbers<[1], [0], [0], [1], [0, 0, 1, 1], [], []>} : vector<16x16xbf16>, vector<16x32xbf16>, vector<16x32xf32> -> vector<16x32xf32>
    %c0_16 = arith.constant 0 : index
    %c32 = arith.constant 32 : index
    %47 = vector.load %arg3[%c0_16, %c32] : memref<8x128xbf16, #tpu.memory_space<vmem>>, vector<8x32xbf16>
    %48 = arith.truncf %46 : vector<16x32xf32> to vector<16x32xbf16>
    %cst_17 = arith.constant dense<0.000000e+00> : vector<16x8xf32>
    %49 = tpu.matmul %48, %47, %cst_17 {dimension_numbers = #tpu.dot_dimension_numbers<[1], [1], [0], [0], [0, 0, 1, 0], [], []>} : vector<16x32xbf16>, vector<8x32xbf16>, vector<16x8xf32> -> vector<16x8xf32>
    %50 = arith.addf %30, %49 : vector<16x8xf32>
    %51 = vector.extract_strided_slice %5 {offsets = [0, 64], sizes = [16, 32], strides = [1, 1]} : vector<16x128xbf16> to vector<16x32xbf16>
    %52 = vector.extract_strided_slice %7 {offsets = [0, 64], sizes = [16, 32], strides = [1, 1]} : vector<16x128xbf16> to vector<16x32xbf16>
    %53 = vector.extract_strided_slice %9 {offsets = [0, 64], sizes = [16, 32], strides = [1, 1]} : vector<16x128xbf16> to vector<16x32xbf16>
    %cst_18 = arith.constant dense<0.000000e+00> : vector<16x16xf32>
    %54 = tpu.matmul %51, %52, %cst_18 {dimension_numbers = #tpu.dot_dimension_numbers<[1], [1], [0], [0], [0, 0, 1, 0], [], []>} : vector<16x32xbf16>, vector<16x32xbf16>, vector<16x16xf32> -> vector<16x16xf32>
    %cst_19 = arith.constant dense<0xFF800000> : vector<16xf32>
    %55 = vector.multi_reduction <maximumf>, %54, %cst_19 [1] : vector<16x16xf32> to vector<16xf32>
    %56 = vector.shape_cast %55 : vector<16xf32> to vector<16x1xf32>
    %57 = vector.broadcast %56 : vector<16x1xf32> to vector<16x16xf32>
    %58 = arith.subf %54, %57 : vector<16x16xf32>
    %59 = math.exp %58 : vector<16x16xf32>
    %cst_20 = arith.constant dense<0.000000e+00> : vector<16xf32>
    %60 = vector.multi_reduction <add>, %59, %cst_20 [1] : vector<16x16xf32> to vector<16xf32>
    %61 = vector.shape_cast %60 : vector<16xf32> to vector<16x1xf32>
    %62 = tpu.reciprocal %61 {approx = true} : vector<16x1xf32> -> vector<16x1xf32>
    %63 = vector.broadcast %62 : vector<16x1xf32> to vector<16x16xf32>
    %64 = arith.mulf %59, %63 : vector<16x16xf32>
    %65 = arith.truncf %64 : vector<16x16xf32> to vector<16x16xbf16>
    %cst_21 = arith.constant dense<0.000000e+00> : vector<16x32xf32>
    %66 = tpu.matmul %65, %53, %cst_21 {dimension_numbers = #tpu.dot_dimension_numbers<[1], [0], [0], [1], [0, 0, 1, 1], [], []>} : vector<16x16xbf16>, vector<16x32xbf16>, vector<16x32xf32> -> vector<16x32xf32>
    %c0_22 = arith.constant 0 : index
    %c64 = arith.constant 64 : index
    %67 = vector.load %arg3[%c0_22, %c64] : memref<8x128xbf16, #tpu.memory_space<vmem>>, vector<8x32xbf16>
    %68 = arith.truncf %66 : vector<16x32xf32> to vector<16x32xbf16>
    %cst_23 = arith.constant dense<0.000000e+00> : vector<16x8xf32>
    %69 = tpu.matmul %68, %67, %cst_23 {dimension_numbers = #tpu.dot_dimension_numbers<[1], [1], [0], [0], [0, 0, 1, 0], [], []>} : vector<16x32xbf16>, vector<8x32xbf16>, vector<16x8xf32> -> vector<16x8xf32>
    %70 = arith.addf %50, %69 : vector<16x8xf32>
    %71 = vector.extract_strided_slice %5 {offsets = [0, 96], sizes = [16, 32], strides = [1, 1]} : vector<16x128xbf16> to vector<16x32xbf16>
    %72 = vector.extract_strided_slice %7 {offsets = [0, 96], sizes = [16, 32], strides = [1, 1]} : vector<16x128xbf16> to vector<16x32xbf16>
    %73 = vector.extract_strided_slice %9 {offsets = [0, 96], sizes = [16, 32], strides = [1, 1]} : vector<16x128xbf16> to vector<16x32xbf16>
    %cst_24 = arith.constant dense<0.000000e+00> : vector<16x16xf32>
    %74 = tpu.matmul %71, %72, %cst_24 {dimension_numbers = #tpu.dot_dimension_numbers<[1], [1], [0], [0], [0, 0, 1, 0], [], []>} : vector<16x32xbf16>, vector<16x32xbf16>, vector<16x16xf32> -> vector<16x16xf32>
    %cst_25 = arith.constant dense<0xFF800000> : vector<16xf32>
    %75 = vector.multi_reduction <maximumf>, %74, %cst_25 [1] : vector<16x16xf32> to vector<16xf32>
    %76 = vector.shape_cast %75 : vector<16xf32> to vector<16x1xf32>
    %77 = vector.broadcast %76 : vector<16x1xf32> to vector<16x16xf32>
    %78 = arith.subf %74, %77 : vector<16x16xf32>
    %79 = math.exp %78 : vector<16x16xf32>
    %cst_26 = arith.constant dense<0.000000e+00> : vector<16xf32>
    %80 = vector.multi_reduction <add>, %79, %cst_26 [1] : vector<16x16xf32> to vector<16xf32>
    %81 = vector.shape_cast %80 : vector<16xf32> to vector<16x1xf32>
    %82 = tpu.reciprocal %81 {approx = true} : vector<16x1xf32> -> vector<16x1xf32>
    %83 = vector.broadcast %82 : vector<16x1xf32> to vector<16x16xf32>
    %84 = arith.mulf %79, %83 : vector<16x16xf32>
    %85 = arith.truncf %84 : vector<16x16xf32> to vector<16x16xbf16>
    %cst_27 = arith.constant dense<0.000000e+00> : vector<16x32xf32>
    %86 = tpu.matmul %85, %73, %cst_27 {dimension_numbers = #tpu.dot_dimension_numbers<[1], [0], [0], [1], [0, 0, 1, 1], [], []>} : vector<16x16xbf16>, vector<16x32xbf16>, vector<16x32xf32> -> vector<16x32xf32>
    %c0_28 = arith.constant 0 : index
    %c96 = arith.constant 96 : index
    %87 = vector.load %arg3[%c0_28, %c96] : memref<8x128xbf16, #tpu.memory_space<vmem>>, vector<8x32xbf16>
    %88 = arith.truncf %86 : vector<16x32xf32> to vector<16x32xbf16>
    %cst_29 = arith.constant dense<0.000000e+00> : vector<16x8xf32>
    %89 = tpu.matmul %88, %87, %cst_29 {dimension_numbers = #tpu.dot_dimension_numbers<[1], [1], [0], [0], [0, 0, 1, 0], [], []>} : vector<16x32xbf16>, vector<8x32xbf16>, vector<16x8xf32> -> vector<16x8xf32>
    %90 = arith.addf %70, %89 : vector<16x8xf32>
    %c0_30 = arith.constant 0 : index
    %c0_31 = arith.constant 0 : index
    %91 = vector.load %arg4[%c0_30, %c0_31] : memref<1x8xf32, #tpu.memory_space<vmem>>, vector<1x8xf32>
    %92 = vector.broadcast %91 : vector<1x8xf32> to vector<16x8xf32>
    %93 = arith.addf %90, %92 : vector<16x8xf32>
    %c0_32 = arith.constant 0 : index
    %c0_33 = arith.constant 0 : index
    %c0_34 = arith.constant 0 : index
    %94 = vector.load %arg5[%c0_32, %c0_33, %c0_34] : memref<1x16x8xf32, #tpu.memory_space<vmem>>, vector<1x16x8xf32>
    %95 = vector.shape_cast %94 : vector<1x16x8xf32> to vector<16x8xf32>
    %96 = vector.shape_cast %93 : vector<16x8xf32> to vector<1x16x8xf32>
    tpu.vector_store %arg5[%c0_32, %c0_33, %c0_34], %96 {strides = array<i32>} : memref<1x16x8xf32, #tpu.memory_space<vmem>>, vector<1x16x8xf32>,
    return
  }
  func.func @transform_0(%arg0: i32) -> (i32, i32, i32) {
    %c0_i32 = arith.constant 0 : i32
    %c0_i32_0 = arith.constant 0 : i32
    %c0_i32_1 = arith.constant 0 : i32
    return %arg0, %c0_i32, %c0_i32_0 : i32, i32, i32
  }
  func.func @transform_1(%arg0: i32) -> (i32, i32) {
    %c0_i32 = arith.constant 0 : i32
    %c0_i32_0 = arith.constant 0 : i32
    %c0_i32_1 = arith.constant 0 : i32
    return %c0_i32, %c0_i32_0 : i32, i32
  }
  func.func @transform_2(%arg0: i32) -> (i32, i32) {
    %c0_i32 = arith.constant 0 : i32
    %c0_i32_0 = arith.constant 0 : i32
    %c0_i32_1 = arith.constant 0 : i32
    return %c0_i32, %c0_i32_0 : i32, i32
  }
  func.func @transform_3(%arg0: i32) -> (i32, i32) {
    %c0_i32 = arith.constant 0 : i32
    %c0_i32_0 = arith.constant 0 : i32
    %c0_i32_1 = arith.constant 0 : i32
    return %c0_i32, %c0_i32_0 : i32, i32
  }
  func.func @transform_4(%arg0: i32) -> (i32, i32, i32) {
    %c0_i32 = arith.constant 0 : i32
    %c0_i32_0 = arith.constant 0 : i32
    %c0_i32_1 = arith.constant 0 : i32
    return %arg0, %c0_i32, %c0_i32_0 : i32, i32, i32
  }
}

</mosaic_0001>

<bundles_post_ra>
// kernel: tpu_custom_call.1
= control target key start
LH: loop header
LB: loop body
LE: loop exit
PB: predicated region body
PF: predicated region fallthrough
CT: control target
= control target key end

     0   :  { %s1299_s15 = smov 0   ;;  %s1455_s0 = inlined_call_operand.vmem [shape: bf16[2,16,8], index: 0, kind: input, shape index: {}]   ;;  %s1456_s1 = inlined_call_operand.vmem [shape: bf16[8,384], index: 1, kind: input, shape index: {}]   ;;  %s1457_s2 = inlined_call_operand.vmem [shape: bf16[8,128], index: 2, kind: input, shape index: {}]   ;;  %s1458_s3 = inlined_call_operand.vmem [shape: f32[1,8], index: 3, kind: input, shape index: {}]   ;;  %s1459_s4 = inlined_call_operand.vmem [shape: f32[2,16,8], index: 4, kind: output, shape index: {}]  }
   0x1 LB: > { %s1071_s16 = sadd.s32 4294967295, %s1266_s15   ;;  %p1075_p0 = scmp.ge.s32.totalorder %s1266_s15, 1  ;;  %s1266_s15 = sphi %s1299_s15, %s14_s15  }
   0x2   : > { %p162_p1 = scmp.lt.s32.totalorder %s1266_s15, 3 }
   0x4   : > { %p163_p2 = pnand %p1075_p0, %p162_p1 }
   0x5   : > { %v201_v0 = vld [vmem:[%s1456_s1] sm:$0xff] (!%p163_p2)  ;;  %vm220_vm0 = vcmask (!%p163_p2), 1043456   ;;  %p188_p3 = scmp.lt.s32.totalorder (!%p163_p2), %s1071_s16, 1  ;;  %v1268_v3 = vmov (!%p163_p2), 0   ;;  %vm216_vm1 = vcmask (!%p163_p2), 64512   ;;  %v1269_v6 = vmov (!%p163_p2), 0.0  }
   0x6   : > { %166 = sbr.rel (%p163_p2) target bundleno = 2619 (0xa3b), region = 36  ;;  %v1082_v1 = vcombine.high (!%p163_p2), %v201_v0, %v201_v0  ;;  %v1081_v2 = vcombine.low (!%p163_p2), %v201_v0, %v201_v0  ;;  %262 = vmatprep.mubr.bf16.mxu0 (!%p163_p2), %v1268_v3  ;;  %1131 = vmatprep.subr.bf16.mxu1 (!%p163_p2), %v1269_v6  ;;  %vm1270_vm2 = vmmov (!%p163_p2), 0   ;;  %vm317_vm3 = vcmask (!%p163_p2), 261120   ;;  %s1271_s23 = smov (!%p163_p2), 96   ;;  %v1226_v14 = vld [vmem:[%s1456_s1 + $0x8] ss:$0 sps:$4 sm:$0xff] (!%p163_p2)  }
   0x7   : > { %1133 = vmatprep.mubr.msk.bf16.mxu1 (!%p163_p2), %vm1270_vm2, %v1269_v6  ;;  %v228_v15 = vsel (!%p163_p2), %vm220_vm0, %v1226_v14, 0  ;;  %vm365_vm4 = vcmask (!%p163_p2), 130048   ;;  %s1272_s26 = smov (!%p163_p2), 64   ;;  %v433_v58 = vld [vmem:[%s1457_s2] sm:$0xf] (!%p163_p2)  ;;  %s1273_s29 = smov (!%p163_p2), 32  }
   0x8   : > { %1084 = vmatprep.subr.msk.bf16.mxu0 (!%p163_p2), %vm220_vm0, %v1082_v1  ;;  %v222_v4 = vsel (!%p163_p2), %vm220_vm0, %v1081_v2, 0  ;;  %1132 = vmatpush3.bf16.msra.mxu1 (!%p163_p2), %v228_v15  ;;  %v1374_v59 = vcombine.low (!%p163_p2), %v433_v58, %v433_v58  ;;  %v616_v14 = vsel (!%p163_p2), %vm317_vm3, %v433_v58, 0 }
   0x9   : > { %231 = vmatpush1.bf16.msra.mxu0 (!%p163_p2), %v222_v4  ;;  %1143 = vmatprep.subr.bf16.mxu1 (!%p163_p2), %v1269_v6 }
   0xa   : > { %1137 = vmatprep.subr.bf16.mxu0 (!%p163_p2), %v1269_v6 }
   0xd   : > { %s1461_s16 = smov (!%p188_p3, %s1071_s16), 1 }
   0xe   : > { %s1103_s19 = sshll.u32 %s1461_s16, 3  ;;  %s1104_s30 = sshll.u32 %s1461_s16, 4 }
   0xf   : > { %s192_s22 = scalar_lea.vmem %s1455_s0, %s1103_s19  ;;  %s197_s9 = scalar_lea.vmem %s1459_s4, %s1104_s30 }
  0x10   : > { %v1225_v5 = vld [vmem:[%s192_s22] sm:$0xff]  }
  0x11   : > { %1085 = vmatmul.mubr.msk.bf16.vlgmr.msra.gmra.mrb[0].mxu0 %vm216_vm1, %v1225_v5  ;;  %1134 = vmatmul.mubr.msk.bf16.vlgmr.msra.gmra.mrb[0].mxu1 %vm216_vm1, %v1225_v5 }
  0x12   : > { %1139 = vmatprep.mubr.msk.bf16.mxu0 %vm1270_vm2, %v1269_v6  ;;  %1145 = vmatprep.mubr.msk.bf16.mxu1 %vm1270_vm2, %v1269_v6 }
  0xe4   : > { %v264_v7 = vpop.f32.mrb[0].mxu0  ;;  %v307_v37 = vpop.f32.mrb[0].mxu1 }
  0xe5   : > { %v266_v8 = vpop.f32.mrb[1].mxu0  ;;  %v1135_v38 = vpop.f32.mrb[1].mxu1 }
  0xe6   : > { %v268_v9 = vpop.f32.mrb[2].mxu0  ;;  %v310_v39 = vpop.f32.mrb[2].mxu1 }
  0xe7   : > { %v1325_v10 = vpack.c.bf16 %v268_v9, %v264_v7  ;;  %v270_v11 = vpop.f32.mrb[3].mxu0  ;;  %v1357_v40 = vpack.c.bf16 %v310_v39, %v307_v37  ;;  %v1136_v41 = vpop.f32.mrb[3].mxu1 }
  0xe8   : > { %v1327_v12 = vpack.c.bf16 %v270_v11, %v266_v8 }
  0xe9   : > { %1144 = vmatpush3.bf16.msra.mxu1 %v1357_v40 }
  0xea   : > { %439 = vrot.lane.b32.xlu0 %v1327_v12, %s1271_s23  ;;  %v322_v13 = vsel %vm317_vm3, %v1327_v12, 0  ;;  %1155 = vmatprep.subr.bf16.mxu1 %v1269_v6 }
  0xeb   : > { %1138 = vmatpush3.bf16.xpose.msra.mxu0 %v322_v13 }
  0xec   : > { %1149 = vmatprep.subr.bf16.mxu0 %v1269_v6 }
  0xee   : > { %436 = vrot.lane.b32.xlu0 %v1325_v10, %s1271_s23 }
  0xf2   : > { %1140 = vmatmul.mubr.msk.bf16.vlgmr.msra.gmra.mrb[4].mxu0 %vm317_vm3, %v1325_v10 }
  0xf3   : > { %1151 = vmatprep.mubr.msk.bf16.mxu0 %vm1270_vm2, %v1269_v6 }
 0x15c   : > { %v440_v16 = vpop.permute.xlu0 %439 }
 0x15d   : > { %v445_v17 = vsel %vm317_vm3, %v440_v16, 0 }
 0x15e   : > { %1150 = vmatpush3.bf16.xpose.msra.mxu0 %v445_v17 }
 0x15f   : > { %1161 = vmatprep.subr.bf16.mxu0 %v1269_v6 }
 0x160   : > { %v437_v18 = vpop.permute.xlu0 %436 }
 0x165   : > { %1152 = vmatmul.mubr.msk.bf16.vlgmr.msra.gmra.mrb[8].mxu0 %vm317_vm3, %v437_v18 }
 0x166   : > { %1163 = vmatprep.mubr.msk.bf16.mxu0 %vm1270_vm2, %v1269_v6 }
 0x1c5   : > { %v358_v19 = vpop.f32.mrb[4].mxu0 }
 0x1c6   : > { %v1141_v20 = vpop.f32.mrb[5].mxu0  ;;  %v366_v21 = vsel %vm365_vm4, %v358_v19, -inf }
 0x1c7   : > { %367 = vmax.xlane.f32.xlu1 %v366_v21  ;;  %v361_v22 = vpop.f32.mrb[6].mxu0 }
 0x1c8   : > { %v1142_v23 = vpop.f32.mrb[7].mxu0  ;;  %v369_v24 = vsel %vm365_vm4, %v361_v22, -inf }
 0x1cb   : > { %370 = vmax.xlane.f32.xlu1 %v369_v24 }
 0x238   : > { %v481_v25 = vpop.f32.mrb[8].mxu0 }
 0x239   : > { %v1153_v26 = vpop.f32.mrb[9].mxu0  ;;  %v488_v27 = vsel %vm365_vm4, %v481_v25, -inf }
 0x23a   : > { %489 = vmax.xlane.f32.xlu0 %v488_v27  ;;  %v484_v28 = vpop.f32.mrb[10].mxu0 }
 0x23b   : > { %v1154_v29 = vpop.f32.mrb[11].mxu0  ;;  %v491_v30 = vsel %vm365_vm4, %v484_v28, -inf }
 0x23c   : > { %492 = vmax.xlane.f32.xlu1 %v491_v30 }
 0x250   : > { %563 = vrot.lane.b32.xlu0 %v1374_v59, %s1271_s23 }
 0x254   : > { %v368_v31 = vpop.xlane.xlu1 %367 }
 0x255   : > { %v372_v32 = vsub.f32 %v358_v19, %v368_v31 }
 0x257   : > { %v374_v33 = vmul.f32 1.442695, %v372_v32 }
 0x258   : > { %v371_v34 = vpop.xlane.xlu1 %370 }
 0x259   : > { %1228 = vpow2.f32 %v374_v33  ;;  %v373_v35 = vsub.f32 %v361_v22, %v371_v34 }
 0x25b   : > { %v376_v36 = vmul.f32 1.442695, %v373_v35 }
 0x25d   : > { %1230 = vpow2.f32 %v376_v36 }
 0x263   : > { %v1229_v42 = vpop.eup %1228 }
 0x264   : > { %v378_v43 = vsel %vm365_vm4, %v1229_v42, 0.0 }
 0x265   : > { %379 = vadd.xlane.f32.xlu1 %v378_v43 }
 0x267   : > { %v1231_v44 = vpop.eup %1230 }
 0x268   : > { %v381_v45 = vsel %vm365_vm4, %v1231_v44, 0.0 }
 0x269   : > { %382 = vadd.xlane.f32.xlu1 %v381_v45 }
 0x2c7   : > { %v490_v46 = vpop.xlane.xlu0 %489 }
 0x2c8   : > { %v494_v47 = vsub.f32 %v481_v25, %v490_v46 }
 0x2c9   : > { %v493_v48 = vpop.xlane.xlu1 %492 }
 0x2ca   : > { %v496_v49 = vmul.f32 1.442695, %v494_v47  ;;  %v495_v50 = vsub.f32 %v484_v28, %v493_v48 }
 0x2cb   : > { %v564_v4 = vpop.permute.xlu0 %563 }
 0x2cc   : > { %1232 = vpow2.f32 %v496_v49  ;;  %v498_v51 = vmul.f32 1.442695, %v495_v50  ;;  %v569_v5 = vsel %vm317_vm3, %v564_v4, 0 }
 0x2cd   : > { %1162 = vmatpush3.bf16.xpose.msra.mxu0 %v569_v5 }
 0x2ce   : > { %1234 = vpow2.f32 %v498_v51  ;;  %1173 = vmatprep.subr.bf16.mxu0 %v1269_v6 }
 0x2d6   : > { %v1233_v52 = vpop.eup %1232 }
 0x2d7   : > { %v500_v53 = vsel %vm365_vm4, %v1233_v52, 0.0 }
 0x2d8   : > { %v1235_v54 = vpop.eup %1234  ;;  %501 = vadd.xlane.f32.xlu1 %v500_v53 }
 0x2d9   : > { %v503_v55 = vsel %vm365_vm4, %v1235_v54, 0.0 }
 0x2dc   : > { %504 = vadd.xlane.f32.xlu1 %v503_v55 }
 0x2ed   : > { %512 = vrot.lane.b32.xlu1 %v1357_v40, %s1271_s23 }
 0x2f1   : > { %661 = vrot.lane.b32.xlu1 %v1327_v12, %s1272_s26 }
 0x2f2   : > { %v380_v56 = vpop.xlane.xlu1 %379 }
 0x2f3   : > { %1236 = vrcp.f32 %v380_v56 }
 0x2f5   : > { %659 = vrot.lane.b32.xlu1 %v1325_v10, %s1272_s26 }
 0x2f6   : > { %v383_v57 = vpop.xlane.xlu1 %382 }
 0x2f7   : > { %1238 = vrcp.f32 %v383_v57 }
 0x2fd   : > { %v1237_v60 = vpop.eup %1236 }
 0x2fe   : > { %v386_v62 = vmul.f32 %v1237_v60, %v1229_v42 }
 0x301   : > { %v1239_v61 = vpop.eup %1238 }
 0x302   : > { %v387_v63 = vmul.f32 %v1239_v61, %v1231_v44 }
 0x304   : > { %v388_v0 = vpack.c.bf16 %v387_v63, %v386_v62 }
 0x306   : > { %1146 = vmatmul.mubr.msk.bf16.vlgmr.msra.gmra.mrb[4].mxu1 %vm365_vm4, %v388_v0 }
 0x307   : > { %1157 = vmatprep.mubr.msk.bf16.mxu1 %vm1270_vm2, %v1269_v6 }
 0x365   : > { %v502_v1 = vpop.xlane.xlu1 %501 }
 0x366   : > { %1240 = vrcp.f32 %v502_v1 }
 0x369   : > { %v505_v2 = vpop.xlane.xlu1 %504 }
 0x36a   : > { %1242 = vrcp.f32 %v505_v2 }
 0x36d   : > { %v513_v3 = vpop.permute.xlu1 %512 }
 0x36e   : > { %1156 = vmatpush3.bf16.msra.mxu1 %v513_v3 }
 0x36f   : > { %1167 = vmatprep.subr.bf16.mxu1 %v1269_v6 }
 0x370   : > { %v1241_v7 = vpop.eup %1240 }
 0x371   : > { %v508_v9 = vmul.f32 %v1241_v7, %v1233_v52  ;;  %v662_v22 = vpop.permute.xlu1 %661 }
 0x372   : > { %v667_v26 = vsel %vm317_vm3, %v662_v22, 0 }
 0x374   : > { %v1243_v8 = vpop.eup %1242 }
 0x375   : > { %v509_v11 = vmul.f32 %v1243_v8, %v1235_v54  ;;  %v660_v27 = vpop.permute.xlu1 %659 }
 0x377   : > { %v510_v13 = vpack.c.bf16 %v509_v11, %v508_v9 }
 0x379   : > { %1158 = vmatmul.mubr.msk.bf16.vlgmr.msra.gmra.mrb[8].mxu1 %vm365_vm4, %v510_v13 }
 0x37a   : > { %1168 = vmatpush3.bf16.xpose.msra.mxu1 %v616_v14  ;;  %1169 = vmatprep.mubr.msk.bf16.mxu1 %vm1270_vm2, %v1269_v6 }
 0x37b   : > { %1179 = vmatprep.subr.bf16.mxu1 %v1269_v6 }
 0x3d9   : > { %v426_v15 = vpop.f32.mrb[4].mxu1 }
 0x3da   : > { %v1147_v16 = vpop.f32.mrb[5].mxu1 }
 0x3db   : > { %v429_v17 = vpop.f32.mrb[6].mxu1 }
 0x3dc   : > { %v434_v18 = vpack.c.bf16 %v429_v17, %v426_v15  ;;  %v1148_v19 = vpop.f32.mrb[7].mxu1 }
 0x3de   : > { %1170 = vmatmul.mubr.msk.bf16.vlgmr.msra.gmra.mrb[12].mxu1 %vm317_vm3, %v434_v18 }
 0x3df   : > { %1181 = vmatprep.mubr.msk.bf16.mxu1 %vm1270_vm2, %v1269_v6 }
 0x44c   : > { %v552_v20 = vpop.f32.mrb[8].mxu1 }
 0x44d   : > { %v1159_v21 = vpop.f32.mrb[9].mxu1 }
 0x44e   : > { %v555_v23 = vpop.f32.mrb[10].mxu1 }
 0x44f   : > { %v559_v24 = vpack.c.bf16 %v555_v23, %v552_v20  ;;  %v1160_v25 = vpop.f32.mrb[11].mxu1 }
 0x451   : > { %1164 = vmatmul.mubr.msk.bf16.vlgmr.msra.gmra.mrb[12].mxu0 %vm317_vm3, %v559_v24 }
 0x452   : > { %1174 = vmatpush3.bf16.xpose.msra.mxu0 %v667_v26  ;;  %1175 = vmatprep.mubr.msk.bf16.mxu0 %vm1270_vm2, %v1269_v6 }
 0x453   : > { %1185 = vmatprep.subr.bf16.mxu0 %v1269_v6 }
 0x459   : > { %1176 = vmatmul.mubr.msk.bf16.vlgmr.msra.gmra.mrb[16].mxu0 %vm317_vm3, %v660_v27 }
 0x45a   : > { %1187 = vmatprep.mubr.msk.bf16.mxu0 %vm1270_vm2, %v1269_v6 }
 0x4b1   : > { %v652_v28 = vpop.f32.mrb[12].mxu1 }
 0x4b2   : > { %v1171_v29 = vpop.f32.mrb[13].mxu1 }
 0x4b3   : > { %v655_v30 = vpop.f32.mrb[14].mxu1 }
 0x4b4   : > { %v1172_v31 = vpop.f32.mrb[15].mxu1 }
 0x524   : > { %v605_v32 = vpop.f32.mrb[12].mxu0 }
 0x525   : > { %v1400_v33 = vadd.f32 %v652_v28, %v605_v32  ;;  %v1165_v34 = vpop.f32.mrb[13].mxu0 }
 0x526   : > { %v608_v35 = vpop.f32.mrb[14].mxu0 }
 0x527   : > { %v1402_v36 = vadd.f32 %v655_v30, %v608_v35  ;;  %v1166_v37 = vpop.f32.mrb[15].mxu0 }
 0x52c   : > { %v703_v38 = vpop.f32.mrb[16].mxu0 }
 0x52d   : > { %v1177_v39 = vpop.f32.mrb[17].mxu0  ;;  %v710_v41 = vsel %vm365_vm4, %v703_v38, -inf }
 0x52e   : > { %711 = vmax.xlane.f32.xlu1 %v710_v41  ;;  %v706_v42 = vpop.f32.mrb[18].mxu0 }
 0x52f   : > { %v1178_v43 = vpop.f32.mrb[19].mxu0  ;;  %v713_v44 = vsel %vm365_vm4, %v706_v42, -inf }
 0x530   : > { %714 = vmax.xlane.f32.xlu0 %v713_v44 }
 0x5bb   : > { %v712_v45 = vpop.xlane.xlu1 %711 }
 0x5bc   : > { %v716_v46 = vsub.f32 %v703_v38, %v712_v45 }
 0x5bd   : > { %v715_v47 = vpop.xlane.xlu0 %714 }
 0x5be   : > { %v718_v48 = vmul.f32 1.442695, %v716_v46  ;;  %v717_v49 = vsub.f32 %v706_v42, %v715_v47 }
 0x5c0   : > { %1244 = vpow2.f32 %v718_v48  ;;  %v720_v50 = vmul.f32 1.442695, %v717_v49  ;;  %v1100_v49 = vld [vmem:[%s1458_s3] ss:$0 sm:$0xff] }
 0x5c2   : > { %1246 = vpow2.f32 %v720_v50 }
 0x5ca   : > { %v1245_v51 = vpop.eup %1244 }
 0x5cb   : > { %v722_v52 = vsel %vm365_vm4, %v1245_v51, 0.0 }
 0x5cc   : > { %v1247_v53 = vpop.eup %1246  ;;  %723 = vadd.xlane.f32.xlu1 %v722_v52 }
 0x5cd   : > { %v725_v54 = vsel %vm365_vm4, %v1247_v53, 0.0 }
 0x5ce   : > { %726 = vadd.xlane.f32.xlu0 %v725_v54 }
 0x5dd   : > { %733 = vrot.lane.b32.xlu1 %v1357_v40, %s1272_s26 }
 0x5e1   : > { %832 = vrot.lane.b32.xlu1 %v1325_v10, %s1273_s29 }
 0x5e4   : > { %834 = vrot.lane.b32.xlu0 %v1327_v12, %s1273_s29 }
 0x659   : > { %v724_v55 = vpop.xlane.xlu1 %723 }
 0x65a   : > { %1248 = vrcp.f32 %v724_v55 }
 0x65b   : > { %v727_v56 = vpop.xlane.xlu0 %726 }
 0x65c   : > { %1250 = vrcp.f32 %v727_v56 }
 0x65d   : > { %v734_v57 = vpop.permute.xlu1 %733 }
 0x65e   : > { %1180 = vmatpush3.bf16.msra.mxu1 %v734_v57 }
 0x65f   : > { %1191 = vmatprep.subr.bf16.mxu1 %v1269_v6  ;;  %v835_v63 = vpop.permute.xlu0 %834 }
 0x660   : > { %v840_v1 = vsel %vm317_vm3, %v835_v63, 0 }
 0x661   : > { %v833_v10 = vpop.permute.xlu1 %832 }
 0x664   : > { %v1249_v58 = vpop.eup %1248 }
 0x665   : > { %v730_v61 = vmul.f32 %v1249_v58, %v1245_v51 }
 0x666   : > { %v1251_v60 = vpop.eup %1250 }
 0x667   : > { %v731_v62 = vmul.f32 %v1251_v60, %v1247_v53 }
 0x669   : > { %v732_v0 = vpack.c.bf16 %v731_v62, %v730_v61 }
 0x66b   : > { %1182 = vmatmul.mubr.msk.bf16.vlgmr.msra.gmra.mrb[16].mxu1 %vm365_vm4, %v732_v0 }
 0x66c   : > { %1192 = vmatpush3.bf16.xpose.msra.mxu1 %v840_v1  ;;  %1193 = vmatprep.mubr.msk.bf16.mxu1 %vm1270_vm2, %v1269_v6 }
 0x66d   : > { %1203 = vmatprep.subr.bf16.mxu1 %v1269_v6 }
 0x673   : > { %1194 = vmatmul.mubr.msk.bf16.vlgmr.msra.gmra.mrb[20].mxu1 %vm317_vm3, %v833_v10 }
 0x674   : > { %1205 = vmatprep.mubr.msk.bf16.mxu1 %vm1270_vm2, %v1269_v6 }
 0x73e   : > { %v773_v12 = vpop.f32.mrb[16].mxu1 }
 0x73f   : > { %v1183_v2 = vpop.f32.mrb[17].mxu1 }
 0x740   : > { %v776_v3 = vpop.f32.mrb[18].mxu1 }
 0x741   : > { %v780_v4 = vpack.c.bf16 %v776_v3, %v773_v12  ;;  %v1184_v5 = vpop.f32.mrb[19].mxu1 }
 0x746   : > { %v876_v7 = vpop.f32.mrb[20].mxu1 }
 0x747   : > { %v1195_v8 = vpop.f32.mrb[21].mxu1  ;;  %v883_v9 = vsel %vm365_vm4, %v876_v7, -inf }
 0x748   : > { %884 = vmax.xlane.f32.xlu1 %v883_v9  ;;  %v879_v11 = vpop.f32.mrb[22].mxu1 }
 0x749   : > { %v1196_v13 = vpop.f32.mrb[23].mxu1  ;;  %v886_v14 = vsel %vm365_vm4, %v879_v11, -inf }
 0x74a   : > { %887 = vmax.xlane.f32.xlu0 %v886_v14 }
 0x7d5   : > { %v885_v15 = vpop.xlane.xlu1 %884 }
 0x7d6   : > { %v889_v16 = vsub.f32 %v876_v7, %v885_v15 }
 0x7d7   : > { %v888_v17 = vpop.xlane.xlu0 %887 }
 0x7d8   : > { %v891_v18 = vmul.f32 1.442695, %v889_v16  ;;  %v890_v19 = vsub.f32 %v879_v11, %v888_v17 }
 0x7da   : > { %1252 = vpow2.f32 %v891_v18  ;;  %v893_v20 = vmul.f32 1.442695, %v890_v19 }
 0x7dc   : > { %1254 = vpow2.f32 %v893_v20 }
 0x7e4   : > { %v1253_v21 = vpop.eup %1252 }
 0x7e5   : > { %v895_v22 = vsel %vm365_vm4, %v1253_v21, 0.0 }
 0x7e6   : > { %v1255_v23 = vpop.eup %1254  ;;  %896 = vadd.xlane.f32.xlu0 %v895_v22 }
 0x7e7   : > { %v898_v24 = vsel %vm365_vm4, %v1255_v23, 0.0 }
 0x7e8   : > { %899 = vadd.xlane.f32.xlu1 %v898_v24 }
 0x7f9   : > { %906 = vrot.lane.b32.xlu1 %v1357_v40, %s1273_s29 }
 0x7fc   : > { %781 = vrot.lane.b32.xlu0 %v1374_v59, %s1272_s26 }
 0x7fd   : > { %954 = vrot.lane.b32.xlu1 %v1374_v59, %s1273_s29 }
 0x873   : > { %v897_v25 = vpop.xlane.xlu0 %896 }
 0x875   : > { %v900_v26 = vpop.xlane.xlu1 %899 }
 0x876   : > { %1256 = vrcp.f32 %v900_v26 }
 0x877   : > { %1258 = vrcp.f32 %v897_v25  ;;  %v782_v27 = vpop.permute.xlu0 %781 }
 0x878   : > { %v787_v28 = vsel %vm317_vm3, %v782_v27, 0 }
 0x879   : > { %1186 = vmatpush3.bf16.xpose.msra.mxu0 %v787_v28  ;;  %v907_v30 = vpop.permute.xlu1 %906 }
 0x87a   : > { %1197 = vmatprep.subr.bf16.mxu0 %v1269_v6 }
 0x87d   : > { %v955_v34 = vpop.permute.xlu1 %954 }
 0x87e   : > { %v960_v35 = vsel %vm317_vm3, %v955_v34, 0 }
 0x87f   : > { %1204 = vmatpush3.bf16.xpose.msra.mxu1 %v960_v35 }
 0x880   : > { %v1257_v29 = vpop.eup %1256  ;;  %1188 = vmatmul.mubr.msk.bf16.vlgmr.msra.gmra.mrb[20].mxu0 %vm317_vm3, %v780_v4 }
 0x881   : > { %v1259_v40 = vpop.eup %1258  ;;  %1198 = vmatpush3.bf16.msra.mxu0 %v907_v30  ;;  %1199 = vmatprep.mubr.msk.bf16.mxu0 %vm1270_vm2, %v1269_v6  ;;  %v904_v59 = vmul.f32 %v1257_v29, %v1255_v23 }
 0x882   : > { %v903_v31 = vmul.f32 %v1259_v40, %v1253_v21 }
 0x884   : > { %v905_v32 = vpack.c.bf16 %v904_v59, %v903_v31 }
 0x888   : > { %1200 = vmatmul.mubr.msk.bf16.vlgmr.msra.gmra.mrb[24].mxu0 %vm365_vm4, %v905_v32 }
 0x953   : > { %v823_v37 = vpop.f32.mrb[20].mxu0 }
 0x954   : > { %v830_v38 = vadd.f32 %v823_v37, %v1400_v33  ;;  %v1189_v39 = vpop.f32.mrb[21].mxu0 }
 0x955   : > { %v826_v41 = vpop.f32.mrb[22].mxu0 }
 0x956   : > { %v831_v42 = vadd.f32 %v826_v41, %v1402_v36  ;;  %v1190_v43 = vpop.f32.mrb[23].mxu0 }
 0x95b   : > { %v946_v44 = vpop.f32.mrb[24].mxu0 }
 0x95c   : > { %v1201_v6 = vpop.f32.mrb[25].mxu0 }
 0x95d   : > { %v949_v45 = vpop.f32.mrb[26].mxu0 }
 0x95e   : > { %v953_v46 = vpack.c.bf16 %v949_v45, %v946_v44  ;;  %v1202_v47 = vpop.f32.mrb[27].mxu0 }
 0x960   : > { %1206 = vmatmul.mubr.msk.bf16.vlgmr.msra.gmra.mrb[24].mxu1 %vm317_vm3, %v953_v46 }
 0xa33   : > { %v996_v48 = vpop.f32.mrb[24].mxu1 }
 0xa34   : > { %v1003_v50 = vadd.f32 %v996_v48, %v830_v38  ;;  %v1207_v33 = vpop.f32.mrb[25].mxu1 }
 0xa35   : > { %v999_v36 = vpop.f32.mrb[26].mxu1 }
 0xa36   : > { %v1012_v51 = vadd.f32 %v1100_v49, %v1003_v50  ;;  %v1004_v52 = vadd.f32 %v999_v36, %v831_v42  ;;  %v1208_v53 = vpop.f32.mrb[27].mxu1 }
 0xa38   : > { %1014 = vst.msk [vmem:[%s197_s9] sm:$0xff] %vm216_vm1, %v1012_v51  ;;  %v1013_v54 = vadd.f32 %v1100_v49, %v1004_v52 }
 0xa3a   : > { %1015 = vst.msk [vmem:[%s197_s9 + $0x8] sm:$0xff] %vm216_vm1, %v1013_v54 }
 0xa3b PF: > { %s14_s15 = sadd.s32 1, %s1266_s15  }
 0xa3c   : > { %p11_p4 = scmp.ge.s32.totalorder %s14_s15, 4  }
 0xa3e   :  { %13 = sbr.rel (!%p11_p4) target bundleno = 1 (0x1), region = 66 }

</bundles_post_ra>
